<compile_context>
chip_gen: v5e
topology: v5e:2x2
jax: 0.10.0
libtpu: 0.0.40
codegen_flags: <defaults>
</compile_context>

<pallas_src>
import functools

import jax
import jax.numpy as jnp
from jax import lax
from jax.experimental import pallas as pl
from jax.experimental.pallas import tpu as pltpu


def _round_up(x, m):
    return ((x + m - 1) // m) * m


def _linear_act_kernel(x_ref, w_ref, b_ref, o_ref, acc_ref, *, activation):
    # x_ref:   (tile_b, tile_k)          input tile
    # w_ref:   (tile_n, tile_k)          weight tile, PyTorch [out, in] layout
    # b_ref:   (1, tile_n)               bias tile (f32)
    # o_ref:   (tile_b, tile_n)          output tile
    # acc_ref: (tile_b, tile_n) f32      accumulator scratch (lives across K)
    k = pl.program_id(2)

    @pl.when(k == 0)
    def _():
        acc_ref[...] = jnp.zeros_like(acc_ref)

    # x @ W.T without materializing a transpose: contract last dim of both.
    acc_ref[...] += lax.dot_general(
        x_ref[...], w_ref[...],
        dimension_numbers=(((1,), (1,)), ((), ())),
        preferred_element_type=jnp.float32)

    @pl.when(k == pl.num_programs(2) - 1)
    def _():
        z = acc_ref[...] + b_ref[...].astype(jnp.float32)
        if activation == "sigmoid":
            y = jax.nn.sigmoid(z)          # EUP transcendental, free next to MXU
        elif activation == "tanh":
            y = jnp.tanh(z)
        else:  # relu
            y = jnp.maximum(z, 0.0)
        o_ref[...] = y.astype(o_ref.dtype)


def linear_w_activation(x, weight, bias, activation="sigmoid", *,
                        tile_b=None, tile_n=None, tile_k=None,
                        matmul_dtype=None, out_dtype=jnp.float32):
    """y = act(x @ weight.T + bias).

    x:      [B, in_features]
    weight: [out_features, in_features]   (PyTorch nn.Linear convention)
    bias:   [out_features]

    matmul_dtype=jnp.bfloat16 trades ~1e-2 relative accuracy for native-rate
    bf16 MXU throughput; default (None) keeps f32 math like the PyTorch module.
    """
    B, in_f = x.shape
    out_f, in_f2 = weight.shape
    assert in_f == in_f2
    assert bias.shape == (out_f,)

    # Cast only when dtypes differ from the requested compute dtype.
    compute_dtype = jnp.float32 if matmul_dtype is None else matmul_dtype
    if x.dtype != compute_dtype:
        x = x.astype(compute_dtype)
    if weight.dtype != compute_dtype:
        weight = weight.astype(compute_dtype)
    if bias.dtype != jnp.float32:
        bias = bias.astype(jnp.float32)

    # ---- tile sizes (all fit well inside default scoped VMEM budgets) ----
    if tile_n is None:
        tile_n = min(512, _round_up(out_f, 128))      # lane-dense output
    if tile_k is None:
        tile_k = in_f if in_f <= 1024 else 512        # full-K block when small
    if tile_b is None:
        tile_b = min(256, _round_up(B, 8))            # sublane-aligned batch

    M_pad = _round_up(B, tile_b)
    N_pad = _round_up(out_f, tile_n)
    K_pad = _round_up(in_f, tile_k)

    # Zero-pad to tile multiples (padded K columns are zero in both operands,
    # so they contribute nothing to the accumulator).
    if M_pad != B or K_pad != in_f:
        x = jnp.pad(x, ((0, M_pad - B), (0, K_pad - in_f)))
    if N_pad != out_f or K_pad != in_f:
        weight = jnp.pad(weight, ((0, N_pad - out_f), (0, K_pad - in_f)))
    b2 = bias.reshape(1, out_f)
    if N_pad != out_f:
        b2 = jnp.pad(b2, ((0, 0), (0, N_pad - out_f)))

    grid = (M_pad // tile_b, N_pad // tile_n, K_pad // tile_k)

    kernel = functools.partial(_linear_act_kernel, activation=activation)

    out = pl.pallas_call(
        kernel,
        out_shape=jax.ShapeDtypeStruct((M_pad, N_pad), out_dtype),
        grid_spec=pltpu.PrefetchScalarGridSpec(
            num_scalar_prefetch=0,
            grid=grid,
            in_specs=[
                pl.BlockSpec((tile_b, tile_k), lambda i, j, k: (i, k)),   # x
                pl.BlockSpec((tile_n, tile_k), lambda i, j, k: (j, k)),   # W
                pl.BlockSpec((1, tile_n), lambda i, j, k: (0, j)),        # bias
            ],
            out_specs=pl.BlockSpec((tile_b, tile_n), lambda i, j, k: (i, j)),
            scratch_shapes=[pltpu.VMEM((tile_b, tile_n), jnp.float32)],
        ),
        compiler_params=pltpu.CompilerParams(
            dimension_semantics=("parallel", "parallel", "arbitrary")),
    )(x, weight, b2)

    if M_pad != B or N_pad != out_f:
        out = out[:B, :out_f]
    return out


if __name__ == "__main__":
    key = jax.random.PRNGKey(0)
    kx, kw, kb, kx2 = jax.random.split(key, 4)

    # Small shapes consistent with the module: batch=8, in=32, out=16.
    B, in_features, out_features = 8, 32, 16
    x = jax.random.normal(kx, (B, in_features), dtype=jnp.float32)
    bound = 1.0 / (in_features ** 0.5)
    weight = jax.random.uniform(kw, (out_features, in_features),
                                minval=-bound, maxval=bound, dtype=jnp.float32)
    bias = jax.random.uniform(kb, (out_features,),
                              minval=-bound, maxval=bound, dtype=jnp.float32)

    # sigmoid path
    out = jax.block_until_ready(
        linear_w_activation(x, weight, bias, activation="sigmoid"))
    ref = jax.nn.sigmoid(x @ weight.T + bias)
    assert out.shape == (B, out_features)
    assert jnp.allclose(out, ref, atol=1e-5, rtol=1e-5)

    # ragged batch (exercises padding path) + tanh
    x2 = jax.random.normal(kx2, (10, in_features), dtype=jnp.float32)
    out2 = jax.block_until_ready(
        linear_w_activation(x2, weight, bias, activation="tanh"))
    ref2 = jnp.tanh(x2 @ weight.T + bias)
    assert out2.shape == (10, out_features)
    assert jnp.allclose(out2, ref2, atol=1e-5, rtol=1e-5)

    # relu
    out3 = jax.block_until_ready(
        linear_w_activation(x, weight, bias, activation="relu"))
    ref3 = jnp.maximum(x @ weight.T + bias, 0.0)
    assert jnp.allclose(out3, ref3, atol=1e-5, rtol=1e-5)

    print("KERNEL_OK")
</pallas_src>

<mosaic_0001>
module attributes {stable_mosaic.version = 11 : i64} {
  func.func @_linear_act_kernel(%arg0: i32, %arg1: i32, %arg2: i32, %arg3: memref<8x32xf32, #tpu.memory_space<vmem>>, %arg4: memref<128x32xf32, #tpu.memory_space<vmem>>, %arg5: memref<1x128xf32, #tpu.memory_space<vmem>>, %arg6: memref<8x128xf32, #tpu.memory_space<vmem>>, %arg7: memref<8x128xf32, #tpu.memory_space<vmem>>) attributes {dimension_semantics = [#tpu.dimension_semantics<parallel>, #tpu.dimension_semantics<parallel>, #tpu.dimension_semantics<arbitrary>], iteration_bounds = array<i64: 1, 1, 1>, scalar_prefetch = 0 : i64, scratch_operands = 1 : i64, tpu.core_type = #tpu.core_type<tc>, window_params = [{transform_indices = @transform_0, window_bounds = array<i64: 8, 32>}, {transform_indices = @transform_1, window_bounds = array<i64: 128, 32>}, {transform_indices = @transform_2, window_bounds = array<i64: 1, 128>}, {transform_indices = @transform_3, window_bounds = array<i64: 8, 128>}]} {
    %c0_i32 = arith.constant 0 : i32
    %0 = arith.cmpi eq, %arg2, %c0_i32 : i32
    %1 = arith.extui %0 : i1 to i32
    %c0_i32_0 = arith.constant 0 : i32
    %2 = arith.cmpi ne, %1, %c0_i32_0 : i32
    scf.if %2 {
      %cst_10 = arith.constant 0.000000e+00 : f32
      %12 = vector.broadcast %cst_10 : f32 to vector<8x128xf32>
      %c0_11 = arith.constant 0 : index
      %c0_12 = arith.constant 0 : index
      %13 = vector.load %arg7[%c0_11, %c0_12] : memref<8x128xf32, #tpu.memory_space<vmem>>, vector<8x128xf32>
      tpu.vector_store %arg7[%c0_11, %c0_12], %12 {strides = array<i32>} : memref<8x128xf32, #tpu.memory_space<vmem>>, vector<8x128xf32>,
    } else {
    }
    %c0 = arith.constant 0 : index
    %c0_1 = arith.constant 0 : index
    %3 = vector.load %arg7[%c0, %c0_1] : memref<8x128xf32, #tpu.memory_space<vmem>>, vector<8x128xf32>
    %c0_2 = arith.constant 0 : index
    %c0_3 = arith.constant 0 : index
    %4 = vector.load %arg3[%c0_2, %c0_3] : memref<8x32xf32, #tpu.memory_space<vmem>>, vector<8x32xf32>
    %c0_4 = arith.constant 0 : index
    %c0_5 = arith.constant 0 : index
    %5 = vector.load %arg4[%c0_4, %c0_5] : memref<128x32xf32, #tpu.memory_space<vmem>>, vector<128x32xf32>
    %cst = arith.constant dense<0.000000e+00> : vector<8x128xf32>
    %6 = tpu.matmul %4, %5, %cst {dimension_numbers = #tpu.dot_dimension_numbers<[1], [1], [0], [0], [0, 0, 1, 0], [], []>} : vector<8x32xf32>, vector<128x32xf32>, vector<8x128xf32> -> vector<8x128xf32>
    %7 = arith.addf %3, %6 : vector<8x128xf32>
    %c0_6 = arith.constant 0 : index
    %c0_7 = arith.constant 0 : index
    %8 = vector.load %arg7[%c0_6, %c0_7] : memref<8x128xf32, #tpu.memory_space<vmem>>, vector<8x128xf32>
    tpu.vector_store %arg7[%c0_6, %c0_7], %7 {strides = array<i32>} : memref<8x128xf32, #tpu.memory_space<vmem>>, vector<8x128xf32>,
    %c0_i32_8 = arith.constant 0 : i32
    %9 = arith.cmpi eq, %arg2, %c0_i32_8 : i32
    %10 = arith.extui %9 : i1 to i32
    %c0_i32_9 = arith.constant 0 : i32
    %11 = arith.cmpi ne, %10, %c0_i32_9 : i32
    scf.if %11 {
      %c0_10 = arith.constant 0 : index
      %c0_11 = arith.constant 0 : index
      %12 = vector.load %arg7[%c0_10, %c0_11] : memref<8x128xf32, #tpu.memory_space<vmem>>, vector<8x128xf32>
      %c0_12 = arith.constant 0 : index
      %c0_13 = arith.constant 0 : index
      %13 = vector.load %arg5[%c0_12, %c0_13] : memref<1x128xf32, #tpu.memory_space<vmem>>, vector<1x128xf32>
      %14 = vector.broadcast %13 : vector<1x128xf32> to vector<8x128xf32>
      %15 = arith.addf %12, %14 : vector<8x128xf32>
      %16 = arith.negf %15 : vector<8x128xf32>
      %17 = math.exp %16 : vector<8x128xf32>
      %cst_14 = arith.constant 1.000000e+00 : f32
      %18 = vector.broadcast %cst_14 : f32 to vector<8x128xf32>
      %19 = arith.addf %18, %17 : vector<8x128xf32>
      %20 = arith.divf %18, %19 : vector<8x128xf32>
      %c0_15 = arith.constant 0 : index
      %c0_16 = arith.constant 0 : index
      %21 = vector.load %arg6[%c0_15, %c0_16] : memref<8x128xf32, #tpu.memory_space<vmem>>, vector<8x128xf32>
      tpu.vector_store %arg6[%c0_15, %c0_16], %20 {strides = array<i32>} : memref<8x128xf32, #tpu.memory_space<vmem>>, vector<8x128xf32>,
    } else {
    }
    return
  }
  func.func @transform_0(%arg0: i32, %arg1: i32, %arg2: i32) -> (i32, i32) {
    %c0_i32 = arith.constant 0 : i32
    return %arg0, %arg2 : i32, i32
  }
  func.func @transform_1(%arg0: i32, %arg1: i32, %arg2: i32) -> (i32, i32) {
    %c0_i32 = arith.constant 0 : i32
    return %arg1, %arg2 : i32, i32
  }
  func.func @transform_2(%arg0: i32, %arg1: i32, %arg2: i32) -> (i32, i32) {
    %c0_i32 = arith.constant 0 : i32
    %c0_i32_0 = arith.constant 0 : i32
    return %c0_i32, %arg1 : i32, i32
  }
  func.func @transform_3(%arg0: i32, %arg1: i32, %arg2: i32) -> (i32, i32) {
    %c0_i32 = arith.constant 0 : i32
    return %arg0, %arg1 : i32, i32
  }
}

</mosaic_0001>

<bundles_post_ra>
// kernel: tpu_custom_call.1
= control target key start
LH: loop header
LB: loop body
LE: loop exit
PB: predicated region body
PF: predicated region fallthrough
CT: control target
= control target key end

     0   :  { %vm38_vm0 = vcmask 261120   ;;  %s302_s0 = inlined_call_operand.vmem [shape: f32[8,32], index: 0, kind: input, shape index: {}]   ;;  %s303_s1 = inlined_call_operand.vmem [shape: f32[128,32], index: 1, kind: input, shape index: {}]   ;;  %s304_s2 = inlined_call_operand.vmem [shape: f32[1,128], index: 2, kind: input, shape index: {}]   ;;  %s305_s3 = inlined_call_operand.hbm [shape: f32[8,128], index: 3, kind: output, shape index: {}]  }
   0x1   :  { %v37_v0 = vld [vmem:[%s303_s1 + $0x78] sm:$0xff]  ;;  %v36_v1 = vld [vmem:[%s303_s1 + $0x70] sm:$0xff] }
   0x2   :  { %157 = vmatpush.xpose.msk.msra.mxu0 %vm38_vm0, %v37_v0 }
   0x3   :  { %8 = vsyncpa [#allocation4], 0  ;;  %v35_v2 = vld [vmem:[%s303_s1 + $0x68] sm:$0xff]  ;;  %v34_v3 = vld [vmem:[%s303_s1 + $0x60] sm:$0xff] }
   0x4   :  { %v33_v4 = vld [vmem:[%s303_s1 + $0x58] sm:$0xff]  ;;  %v32_v5 = vld [vmem:[%s303_s1 + $0x50] sm:$0xff]  ;;  %v31_v6 = vld [vmem:[%s303_s1 + $0x48] sm:$0xff] }
   0x5   :  { %v30_v7 = vld [vmem:[%s303_s1 + $0x40] sm:$0xff]  ;;  %v29_v8 = vld [vmem:[%s303_s1 + $0x38] sm:$0xff]  ;;  %v28_v9 = vld [vmem:[%s303_s1 + $0x30] sm:$0xff] }
   0x6   :  { %158 = vmatpush.xpose.msk.msra.mxu0 %vm38_vm0, %v36_v1  ;;  %v27_v10 = vld [vmem:[%s303_s1 + $0x28] sm:$0xff]  ;;  %v26_v11 = vld [vmem:[%s303_s1 + $0x20] sm:$0xff]  ;;  %v25_v12 = vld [vmem:[%s303_s1 + $0x18] sm:$0xff] }
   0x7   :  { %v24_v13 = vld [vmem:[%s303_s1 + $0x10] sm:$0xff]  ;;  %v23_v14 = vld [vmem:[%s303_s1 + $0x8] sm:$0xff]  ;;  %v22_v15 = vld [vmem:[%s303_s1] sm:$0xff] }
   0x8   :  { %v21_v16 = vld [vmem:[%s302_s0] sm:$0xff]  ;;  %s207_s0 = smov [#allocation3]  }
   0x9   :  { %v176_v17 = vld [vmem:[%s304_s2] ss:$0 sm:$0xff]  ;;  %s146_s1 = sshll.u32 %s207_s0, 4  ;;  %s148_s2 = sshll.u32 %s305_s3, 4  ;;  %s147_s1 = int_to_ptr.vmem [resolvable:$true] %s146_s1  ;;  %s149_s2 = int_to_ptr.hbm [resolvable:$true] %s148_s2 }
   0xa   :  { %159 = vmatpush.xpose.msk.msra.mxu0 %vm38_vm0, %v35_v2 }
   0xe   :  { %160 = vmatpush.xpose.msk.msra.mxu0 %vm38_vm0, %v34_v3 }
  0x12   :  { %161 = vmatpush.xpose.msk.msra.mxu0 %vm38_vm0, %v33_v4 }
  0x16   :  { %162 = vmatpush.xpose.msk.msra.mxu0 %vm38_vm0, %v32_v5 }
  0x1a   :  { %163 = vmatpush.xpose.msk.msra.mxu0 %vm38_vm0, %v31_v6 }
  0x1e   :  { %164 = vmatpush.xpose.msk.msra.mxu0 %vm38_vm0, %v30_v7 }
  0x22   :  { %165 = vmatpush.xpose.msk.msra.mxu0 %vm38_vm0, %v29_v8 }
  0x26   :  { %166 = vmatpush.xpose.msk.msra.mxu0 %vm38_vm0, %v28_v9 }
  0x2a   :  { %167 = vmatpush.xpose.msk.msra.mxu0 %vm38_vm0, %v27_v10 }
  0x2e   :  { %168 = vmatpush.xpose.msk.msra.mxu0 %vm38_vm0, %v26_v11 }
  0x32   :  { %169 = vmatpush.xpose.msk.msra.mxu0 %vm38_vm0, %v25_v12 }
  0x36   :  { %170 = vmatpush.xpose.msk.msra.mxu0 %vm38_vm0, %v24_v13 }
  0x3a   :  { %171 = vmatpush.xpose.msk.msra.mxu0 %vm38_vm0, %v23_v14 }
  0x3e   :  { %172 = vmatpush.xpose.msk.msra.mxu0 %vm38_vm0, %v22_v15 }
  0x41   :  { %173 = vmatmul.msk.f32.vlgmr.msra.gmra.mxu0 %vm38_vm0, %v21_v16 }
  0xbe   :  { %v107_v18 = vpop.f32.mrf.mxu0 }
  0xbf   :  { %v120_v19 = vadd.f32 %v176_v17, %v107_v18 }
  0xc1   :  { %v174_v20 = vmul.f32 -1.442695, %v120_v19 }
  0xc3   :  { %177 = vpow2.f32 %v174_v20 }
  0xc9   :  { %v178_v21 = vpop.eup %177 }
  0xca   :  { %v124_v22 = vadd.f32 1.0, %v178_v21 }
  0xcc   :  { %179 = vrcp.f32 %v124_v22  ;;  %v136_v26 = vand.u32 2147483648, %v124_v22  ;;  %v134_v28 = vand.u32 2147483647, %v124_v22  ;;  %vm130_vm2 = vweird.f32 %v124_v22 }
  0xce   :  { %v137_v30 = vor.u32 1.1754944e-38, %v136_v26  ;;  %vm135_vm4 = vcmp.eq.f32.partialorder %v134_v28, 8.507059e+37 }
  0xd2   :  { %v180_v23 = vpop.eup %179 }
  0xd3   :  { %v126_v24 = vmul.f32 %v180_v23, %v124_v22  ;;  %vm131_vm1 = vweird.f32 %v180_v23 }
  0xd4   :  { %vm132_vm3 = vmor %vm130_vm2, %vm131_vm1 }
  0xd5   :  { %v127_v25 = vsub.f32 1.0, %v126_v24 }
  0xd7   :  { %v128_v27 = vmul.f32 %v180_v23, %v127_v25 }
  0xd9   :  { %v129_v29 = vadd.f32 %v180_v23, %v128_v27 }
  0xdb   :  { %v133_v31 = vsel %vm132_vm3, %v180_v23, %v129_v29 }
  0xdc   :  { %v138_v32 = vsel %vm135_vm4, %v137_v30, %v133_v31 }
  0xdd   :  { %140 = vst [vmem:[#allocation3] sm:$0xff] %v138_v32 }
  0xde   :  { %151 = dma.vmem_to_hbm [thread:$0]  %s147_s1, 128, %s149_s2, [#allocation4]  }
  0xdf   :  { %205 = dma.done.wait [#allocation4], 128  }
  0xe0   :  { %206 = vsyncadd [#allocation4], 4294967168 }
  0xe1   :  { %156 = vsyncpa [#allocation4], 1 }

</bundles_post_ra>
